<compile_context>
chip_gen: v5e
topology: v5e:2x2
jax: 0.10.0
libtpu: 0.0.40
codegen_flags: <defaults>
</compile_context>

<pallas_src>
import functools

import jax
import jax.numpy as jnp
from jax.experimental import pallas as pl
from jax.experimental.pallas import tpu as pltpu


def _cdiv(a, b):
    return -(-a // b)


def pack_camera_tables(pitch_w, shot_w, dof_w):
    """One-time weight prep: row-concatenate the three tables -> (Vp+Vs+Vd, D)."""
    return jnp.concatenate([pitch_w, shot_w, dof_w], axis=0)


def _camera_attr_kernel(attr_ref, table_ref, out_ref, *, vp, vs, vd):
    """Fused 3-way embedding lookup for one batch tile.

    attr_ref : (3*tb, 1) VMEM -- row r = b*3 + slot holds that attribute id (float ok)
    table_ref: (Vtot, D) VMEM -- row-concatenated [pitch; shot; dof] tables
    out_ref  : (3*tb, D) VMEM -- row r = b*3 + slot embedding (== (tb,3,D) row-major)
    """
    rows = attr_ref.shape[0]
    vtot = table_ref.shape[0]

    # .long()-equivalent truncation (exact for integer-valued attributes).
    ids = attr_ref[...].astype(jnp.int32)                                # (3tb, 1)

    # Per-row slot (0=pitch, 1=shot, 2=dof).  Block row count is a multiple of
    # 3, so the in-block row index has the same slot as the global row index.
    slot = jax.lax.broadcasted_iota(jnp.int32, (rows, 1), 0) % 3
    seg_off = jnp.where(slot == 0, 0, jnp.where(slot == 1, vp, vp + vs))
    seg_sz = jnp.where(slot == 0, vp, jnp.where(slot == 1, vs, vd))

    # Clamp each id to its own vocab segment so out-of-range / negative ids
    # cannot alias into a neighboring table.
    col = jnp.clip(ids, 0, seg_sz - 1) + seg_off                         # (3tb, 1)

    lane = jax.lax.broadcasted_iota(jnp.int32, (rows, vtot), 1)
    onehot = (lane == col).astype(table_ref.dtype)                       # (3tb, Vtot)

    # One MXU push/drain; result rows are already in (b, slot) order, so a
    # single contiguous store covers the whole output block.
    out_ref[...] = jnp.dot(
        onehot, table_ref[...], preferred_element_type=jnp.float32
    ).astype(out_ref.dtype)


def _choose_tiling(batch, d, out_itemsize):
    """Pick (tb, padded_batch, grid) so that:
      (a) the per-block pipeline footprint stays under ~12 MiB of VMEM
          (safe under v5e's 16 MiB default scoped limit and v7x's 64 MiB),
      (b) tb is a multiple of 8 for non-trivial batches,
      (c) grid >= 2 when B >= 16 so v7x's second TensorCore gets work.
    """
    vmem_budget = 12 << 20
    # Per batch-row resident bytes: double-buffered output + f32 matmul
    # intermediate + one-hot block (lanes padded to >=128).  Table is tiny.
    per_row = 3 * d * (2 * out_itemsize + 4) + 3 * 128 * 4
    cap = max(8, min(1024, (vmem_budget // per_row) // 8 * 8))

    if batch < 16:
        return batch, batch, 1                         # single full-array block
    n_blk = max(2, _cdiv(batch, cap))
    tb = ((_cdiv(batch, n_blk) + 7) // 8) * 8          # round up to multiple of 8
    n_blk = _cdiv(batch, tb)
    return tb, n_blk * tb, n_blk


def _xla_forward(attr3, table, vp, vs, vd):
    """Plain-XLA path: for tiny conditioner batches pallas_call fixed cost dominates."""
    ids = attr3.astype(jnp.int32)
    off = jnp.asarray([0, vp, vp + vs], dtype=jnp.int32)
    size = jnp.asarray([vp, vs, vd], dtype=jnp.int32)
    col = jnp.clip(ids, 0, size - 1) + off
    return jnp.take(table, col, axis=0)                # (B, 3, D)


def camera_attr_forward(
    camera_attributes,
    table,
    *,
    num_pitch,
    num_shot_type,
    num_depth_of_field,
    out_dtype=None,
    xla_small_batch_threshold=64,
):
    """JAX wrapper mirroring CameraAttr.forward.

    camera_attributes : (B, >=3) float/int array of attribute ids
    table             : pack_camera_tables() output, shape (Vp+Vs+Vd, D)
    Returns {'crossattn_emb': (B, 3, D), 'crossattn_mask': (B, 3) bool}.
    """
    B, C = camera_attributes.shape
    assert C >= 3, "camera_attributes must have at least 3 columns"
    vtot, D = table.shape
    assert vtot == num_pitch + num_shot_type + num_depth_of_field
    out_dtype = table.dtype if out_dtype is None else out_dtype

    attr3 = camera_attributes[:, :3]
    mask = jnp.ones((B, 3), dtype=jnp.bool_)

    if B <= xla_small_batch_threshold:
        tokens = _xla_forward(
            attr3, table, num_pitch, num_shot_type, num_depth_of_field
        ).astype(out_dtype)
        return {"crossattn_emb": tokens, "crossattn_mask": mask}

    tb, b_pad, n_blk = _choose_tiling(B, D, jnp.dtype(out_dtype).itemsize)
    if b_pad > B:
        attr3 = jnp.pad(attr3, ((0, b_pad - B), (0, 0)))
    attr_flat = attr3.reshape(b_pad * 3, 1)            # row r = b*3 + slot (free reshape)

    kernel = functools.partial(
        _camera_attr_kernel, vp=num_pitch, vs=num_shot_type, vd=num_depth_of_field
    )

    emb_flat = pl.pallas_call(
        kernel,
        out_shape=jax.ShapeDtypeStruct((b_pad * 3, D), out_dtype),
        grid=(n_blk,),
        in_specs=[
            pl.BlockSpec((3 * tb, 1), lambda i: (i, 0)),
            # Grid-invariant table block; Pallas skips re-fetch across steps.
            pl.BlockSpec((vtot, D), lambda i: (0, 0)),
        ],
        out_specs=pl.BlockSpec((3 * tb, D), lambda i: (i, 0)),
        compiler_params=pltpu.CompilerParams(
            dimension_semantics=("parallel",),  # shard B-blocks across v7x's two TCs
        ),
    )(attr_flat, table)

    tokens = emb_flat.reshape(b_pad, 3, D)[:B]         # contiguous reshape + trim pad
    return {"crossattn_emb": tokens, "crossattn_mask": mask}


if __name__ == "__main__":
    key = jax.random.PRNGKey(0)
    k1, k2, k3, k4, k5, k6 = jax.random.split(key, 6)

    # Small, forward-consistent shapes.
    B = 2
    context_dim = 32
    num_pitch = 8
    num_shot_type = 6
    num_depth_of_field = 4

    # Deterministic "nn.Embedding" weights: N(0, 1), matching PyTorch default init.
    pitch_w = jax.random.normal(k1, (num_pitch, context_dim), dtype=jnp.float32)
    shot_w = jax.random.normal(k2, (num_shot_type, context_dim), dtype=jnp.float32)
    dof_w = jax.random.normal(k3, (num_depth_of_field, context_dim), dtype=jnp.float32)
    table = pack_camera_tables(pitch_w, shot_w, dof_w)

    # camera_attributes arrives as a float tensor of integer-valued attributes.
    camera_attributes = jnp.stack(
        [
            jax.random.randint(k4, (B,), 0, num_pitch),
            jax.random.randint(k5, (B,), 0, num_shot_type),
            jax.random.randint(k6, (B,), 0, num_depth_of_field),
        ],
        axis=1,
    ).astype(jnp.float32)                                        # (B, 3)

    # Force the Pallas path (threshold 0) so the kernel itself is exercised.
    out = camera_attr_forward(
        camera_attributes, table,
        num_pitch=num_pitch, num_shot_type=num_shot_type,
        num_depth_of_field=num_depth_of_field,
        xla_small_batch_threshold=0,
    )
    tokens = jax.block_until_ready(out["crossattn_emb"])
    mask = jax.block_until_ready(out["crossattn_mask"])

    # Pure-JAX reference (embedding lookup via take).
    idx = camera_attributes[:, :3].astype(jnp.int32)
    ref = jnp.stack(
        [
            jnp.take(pitch_w, idx[:, 0], axis=0),
            jnp.take(shot_w, idx[:, 1], axis=0),
            jnp.take(dof_w, idx[:, 2], axis=0),
        ],
        axis=1,
    )
    assert tokens.shape == (B, 3, context_dim)
    assert mask.shape == (B, 3) and mask.dtype == jnp.bool_ and bool(jnp.all(mask))
    assert jnp.allclose(tokens, ref, atol=1e-6), "mismatch vs reference (small B)"

    # Exercise the multi-block / padded path (grid >= 2, ragged batch).
    B2 = 20
    attrs2 = jnp.stack(
        [
            jax.random.randint(k4, (B2,), 0, num_pitch),
            jax.random.randint(k5, (B2,), 0, num_shot_type),
            jax.random.randint(k6, (B2,), 0, num_depth_of_field),
        ],
        axis=1,
    ).astype(jnp.float32)
    out2 = camera_attr_forward(
        attrs2, table,
        num_pitch=num_pitch, num_shot_type=num_shot_type,
        num_depth_of_field=num_depth_of_field,
        xla_small_batch_threshold=0,
    )
    tokens2 = jax.block_until_ready(out2["crossattn_emb"])
    idx2 = attrs2.astype(jnp.int32)
    ref2 = jnp.stack(
        [
            jnp.take(pitch_w, idx2[:, 0], axis=0),
            jnp.take(shot_w, idx2[:, 1], axis=0),
            jnp.take(dof_w, idx2[:, 2], axis=0),
        ],
        axis=1,
    )
    assert tokens2.shape == (B2, 3, context_dim)
    assert jnp.allclose(tokens2, ref2, atol=1e-6), "mismatch vs reference (multi-block)"

    # The small-batch XLA fast path agrees with the kernel path.
    out_fast = camera_attr_forward(
        attrs2, table,
        num_pitch=num_pitch, num_shot_type=num_shot_type,
        num_depth_of_field=num_depth_of_field,
        xla_small_batch_threshold=128,
    )
    assert jnp.allclose(out_fast["crossattn_emb"], tokens2, atol=1e-6)

    print("KERNEL_OK")
</pallas_src>

<mosaic_0001>
module attributes {stable_mosaic.version = 11 : i64} {
  func.func @_camera_attr_kernel(%arg0: i32, %arg1: memref<6x1xf32, #tpu.memory_space<vmem>>, %arg2: memref<18x32xf32, #tpu.memory_space<vmem>>, %arg3: memref<6x32xf32, #tpu.memory_space<vmem>>) attributes {dimension_semantics = [#tpu.dimension_semantics<parallel>], iteration_bounds = array<i64: 1>, scalar_prefetch = 0 : i64, scratch_operands = 0 : i64, tpu.core_type = #tpu.core_type<tc>, window_params = [{transform_indices = @transform_0, window_bounds = array<i64: 6, 1>}, {pipeline_mode = #tpu.pipeline_mode<synchronous>, transform_indices = @transform_1, window_bounds = array<i64: 18, 32>}, {transform_indices = @transform_2, window_bounds = array<i64: 6, 32>}]} {
    %c0 = arith.constant 0 : index
    %c0_0 = arith.constant 0 : index
    %0 = vector.load %arg1[%c0, %c0_0] : memref<6x1xf32, #tpu.memory_space<vmem>>, vector<6x1xf32>
    %1 = arith.fptosi %0 : vector<6x1xf32> to vector<6x1xi32>
    %2 = tpu.iota {dimensions = array<i32: 0>} : vector<6x1xi32>
    %c3_i32 = arith.constant 3 : i32
    %c0_i32 = arith.constant 0 : i32
    %3 = arith.cmpi eq, %c3_i32, %c0_i32 : i32
    %c1_i32 = arith.constant 1 : i32
    %4 = arith.select %3, %c1_i32, %c3_i32 : i32
    %5 = vector.broadcast %4 : i32 to vector<6x1xi32>
    %6 = arith.remsi %2, %5 : vector<6x1xi32>
    %c0_i32_1 = arith.constant 0 : i32
    %7 = vector.broadcast %c0_i32_1 : i32 to vector<6x1xi32>
    %8 = arith.cmpi ne, %6, %7 : vector<6x1xi32>
    %c0_i32_2 = arith.constant 0 : i32
    %9 = vector.broadcast %c0_i32_2 : i32 to vector<6x1xi32>
    %10 = arith.cmpi slt, %6, %9 : vector<6x1xi32>
    %c0_i32_3 = arith.constant 0 : i32
    %11 = arith.cmpi slt, %4, %c0_i32_3 : i32
    %12 = vector.broadcast %11 : i1 to vector<6x1xi1>
    %13 = vector.broadcast %12 : vector<6x1xi1> to vector<6x1xi1>
    %14 = arith.xori %10, %13 : vector<6x1xi1>
    %15 = arith.andi %14, %8 : vector<6x1xi1>
    %16 = vector.broadcast %4 : i32 to vector<6x1xi32>
    %17 = arith.addi %6, %16 : vector<6x1xi32>
    %18 = arith.select %15, %17, %6 : vector<6x1xi1>, vector<6x1xi32>
    %c0_i32_4 = arith.constant 0 : i32
    %19 = vector.broadcast %c0_i32_4 : i32 to vector<6x1xi32>
    %20 = arith.cmpi eq, %18, %19 : vector<6x1xi32>
    %c1_i32_5 = arith.constant 1 : i32
    %21 = vector.broadcast %c1_i32_5 : i32 to vector<6x1xi32>
    %22 = arith.cmpi eq, %18, %21 : vector<6x1xi32>
    %c8_i32 = arith.constant 8 : i32
    %c14_i32 = arith.constant 14 : i32
    %23 = vector.broadcast %c8_i32 : i32 to vector<6x1xi32>
    %24 = vector.broadcast %c14_i32 : i32 to vector<6x1xi32>
    %25 = arith.select %22, %23, %24 : vector<6x1xi1>, vector<6x1xi32>
    %c0_i32_6 = arith.constant 0 : i32
    %26 = vector.broadcast %c0_i32_6 : i32 to vector<6x1xi32>
    %27 = arith.select %20, %26, %25 : vector<6x1xi1>, vector<6x1xi32>
    %c0_i32_7 = arith.constant 0 : i32
    %28 = vector.broadcast %c0_i32_7 : i32 to vector<6x1xi32>
    %29 = arith.cmpi eq, %18, %28 : vector<6x1xi32>
    %c1_i32_8 = arith.constant 1 : i32
    %30 = vector.broadcast %c1_i32_8 : i32 to vector<6x1xi32>
    %31 = arith.cmpi eq, %18, %30 : vector<6x1xi32>
    %c6_i32 = arith.constant 6 : i32
    %c4_i32 = arith.constant 4 : i32
    %32 = vector.broadcast %c6_i32 : i32 to vector<6x1xi32>
    %33 = vector.broadcast %c4_i32 : i32 to vector<6x1xi32>
    %34 = arith.select %31, %32, %33 : vector<6x1xi1>, vector<6x1xi32>
    %c8_i32_9 = arith.constant 8 : i32
    %35 = vector.broadcast %c8_i32_9 : i32 to vector<6x1xi32>
    %36 = arith.select %29, %35, %34 : vector<6x1xi1>, vector<6x1xi32>
    %c1_i32_10 = arith.constant 1 : i32
    %37 = vector.broadcast %c1_i32_10 : i32 to vector<6x1xi32>
    %38 = arith.subi %36, %37 : vector<6x1xi32>
    %c0_i32_11 = arith.constant 0 : i32
    %39 = vector.broadcast %c0_i32_11 : i32 to vector<6x1xi32>
    %40 = arith.maxsi %39, %1 : vector<6x1xi32>
    %41 = arith.minsi %38, %40 : vector<6x1xi32>
    %42 = arith.addi %41, %27 : vector<6x1xi32>
    %43 = tpu.iota {dimensions = array<i32: 1>} : vector<6x18xi32>
    %44 = vector.broadcast %42 : vector<6x1xi32> to vector<6x18xi32>
    %45 = arith.cmpi eq, %43, %44 : vector<6x18xi32>
    %46 = arith.extui %45 : vector<6x18xi1> to vector<6x18xi32>
    %47 = arith.sitofp %46 : vector<6x18xi32> to vector<6x18xf32>
    %c0_12 = arith.constant 0 : index
    %c0_13 = arith.constant 0 : index
    %48 = vector.load %arg2[%c0_12, %c0_13] : memref<18x32xf32, #tpu.memory_space<vmem>>, vector<18x32xf32>
    %cst = arith.constant dense<0.000000e+00> : vector<6x32xf32>
    %49 = tpu.matmul %47, %48, %cst {dimension_numbers = #tpu.dot_dimension_numbers<[1], [0], [0], [1], [0, 0, 1, 1], [], []>} : vector<6x18xf32>, vector<18x32xf32>, vector<6x32xf32> -> vector<6x32xf32>
    %c0_14 = arith.constant 0 : index
    %c0_15 = arith.constant 0 : index
    %50 = vector.load %arg3[%c0_14, %c0_15] : memref<6x32xf32, #tpu.memory_space<vmem>>, vector<6x32xf32>
    tpu.vector_store %arg3[%c0_14, %c0_15], %49 {strides = array<i32>} : memref<6x32xf32, #tpu.memory_space<vmem>>, vector<6x32xf32>,
    return
  }
  func.func @transform_0(%arg0: i32) -> (i32, i32) {
    %c0_i32 = arith.constant 0 : i32
    %c0_i32_0 = arith.constant 0 : i32
    return %arg0, %c0_i32 : i32, i32
  }
  func.func @transform_1(%arg0: i32) -> (i32, i32) {
    %c0_i32 = arith.constant 0 : i32
    %c0_i32_0 = arith.constant 0 : i32
    %c0_i32_1 = arith.constant 0 : i32
    return %c0_i32, %c0_i32_0 : i32, i32
  }
  func.func @transform_2(%arg0: i32) -> (i32, i32) {
    %c0_i32 = arith.constant 0 : i32
    %c0_i32_0 = arith.constant 0 : i32
    return %arg0, %c0_i32 : i32, i32
  }
}

</mosaic_0001>

<bundles_post_ra>
// kernel: tpu_custom_call.1
= control target key start
LH: loop header
LB: loop body
LE: loop exit
PB: predicated region body
PF: predicated region fallthrough
CT: control target
= control target key end

     0   :  { %7 = vsyncpa [#allocation3], 0  ;;  %s238_s0 = inlined_call_operand.vmem [shape: f32[6,1], index: 0, kind: input, shape index: {}]   ;;  %s239_s1 = inlined_call_operand.hbm [shape: f32[18,32], index: 1, kind: input, shape index: {}]   ;;  %s240_s2 = inlined_call_operand.hbm [shape: f32[6,32], index: 2, kind: output, shape index: {}]  }
   0x1   :  { %8 = vsyncpa [#allocation4], 0  ;;  %s15_s11 = sshll.u32 %s239_s1, 4  ;;  %s206_s12 = smov [#allocation2]   ;;  %s16_s11 = int_to_ptr.hbm [resolvable:$true] %s15_s11 }
   0x2   :  { %s17_s13 = sshll.u32 %s206_s12, 4  ;;  %s207_s14 = smov 128   ;;  %s18_s13 = int_to_ptr.vmem [resolvable:$true] %s17_s13 }
   0x3   :  { %s208_s15 = smov 8  }
   0x4   :  { %23 = dma.hbm_to_vmem [thread:$0]  %s16_s11, 384, %s18_s13, [#allocation3], %s207_s14, %s207_s14, %s208_s15  }
   0x5   :  { %202 = dma.done.wait [#allocation3], 384  }
   0x6   :  { %203 = vsyncadd [#allocation3], 4294966912  ;;  %v30_v0 = vlaneseq  ;;  %v209_v1 = vmov 0   ;;  %v88_v8 = vld [vmem:[#allocation2 + $0x10] sm:$0x3]  ;;  %vm93_vm0 = vcmask 1041408  }
   0x7   :  { %153 = vset.pattern.permute.xlu0 %v209_v1  ;;  %v87_v9 = vld [vmem:[#allocation2 + $0x8] sm:$0xff]  ;;  %138 = vmatpush.msk.msra.mxu0 %vm93_vm0, %v88_v8  ;;  %v28_v20 = vld [vmem:[%s238_s0] sm:$0x3f]  ;;  %v210_v32 = vmov 14   ;;  %v211_v34 = vmov 4   ;;  %vm89_vm11 = vcmask 146432  }
   0x8   :  { %v31_v2 = vshrl.u32 %v30_v0, 7  ;;  %v141_v22 = vceil.f32 %v28_v20  ;;  %v142_v23 = vfloor.f32 %v28_v20  ;;  %vm140_vm3 = vcmp.lt.s32.totalorder %v28_v20, 0  ;;  %v86_v42 = vld [vmem:[#allocation2] sm:$0xff]  ;;  %s213_s0 = smov [#allocation5]   ;;  %s126_s20 = sshll.u32 %s240_s2, 4  ;;  %s127_s20 = int_to_ptr.hbm [resolvable:$true] %s126_s20 }
   0x9   :  { %111 = vmatpush.msra.mxu0 %v87_v9  ;;  %v79_v43 = vand.u32 127, %v30_v0  ;;  %v212_v45 = vmov 0.0   ;;  %s124_s17 = sshll.u32 %s213_s0, 4  ;;  %vm117_vm13 = vcmask 259072   ;;  %s125_s17 = int_to_ptr.vmem [resolvable:$true] %s124_s17 }
   0xa   :  { %v35_v3 = vand.u32 65535, %v31_v2  ;;  %v36_v4 = vshrl.u32 %v31_v2, 16  ;;  %v143_v26 = vsel %vm140_vm3, %v141_v22, %v142_v23 }
   0xb   :  { %v144_v29 = vcvt.f32.s32 %v143_v26  ;;  %112 = vmatpush.msra.mxu0 %v86_v42 }
   0xc   :  { %v38_v5 = vmul.u32 43691, %v35_v3  ;;  %v39_v6 = vmul.u32 43690, %v35_v3  ;;  %v40_v7 = vmul.u32 43691, %v36_v4  ;;  %v41_v10 = vmul.u32 43690, %v36_v4 }
   0xd   :  { %vm73_vm7 = vcmp.gt.s32.totalorder %v144_v29, 0 }
   0xe   :  { %v42_v11 = vshll.u32 %v39_v6, 16  ;;  %v44_v12 = vshll.u32 %v40_v7, 16  ;;  %v43_v15 = vshrl.u32 %v39_v6, 16  ;;  %v45_v18 = vshrl.u32 %v40_v7, 16 }
   0xf   :  { %v74_v37 = vsel %vm73_vm7, %v144_v29, 0 }
  0x10   :  { %vm46_vm1 = vc.u32 %v38_v5, %v42_v11  ;;  %v48_v13 = vadd.s32 %v42_v11, %v38_v5 }
  0x11   :  { %v47_v14 = vsel %vm46_vm1, 1, %v209_v1 }
  0x12   :  { %v49_v16 = vadd.s32 %v47_v14, %v41_v10  ;;  %vm50_vm2 = vc.u32 %v48_v13, %v44_v12 }
  0x13   :  { %v51_v17 = vsel %vm50_vm2, 1, %v209_v1 }
  0x14   :  { %v53_v19 = vadd.s32 %v51_v17, %v49_v16 }
  0x16   :  { %v54_v21 = vadd.s32 %v53_v19, %v43_v15 }
  0x18   :  { %v55_v24 = vadd.s32 %v54_v21, %v45_v18 }
  0x1a   :  { %v56_v25 = vshrl.u32 %v55_v24, 1 }
  0x1c   :  { %v57_v27 = vmul.u32 3, %v56_v25 }
  0x1e   :  { %v58_v28 = vsub.s32 %v31_v2, %v57_v27 }
  0x20   :  { %vm61_vm4 = vcmp.ne.s32.totalorder %v58_v28, 0  ;;  %vm62_vm5 = vcmp.lt.s32.totalorder %v58_v28, 0  ;;  %v64_v30 = vadd.s32 3, %v58_v28 }
  0x21   :  { %vm63_vm6 = vmand %vm62_vm5, %vm61_vm4 }
  0x22   :  { %v65_v31 = vsel %vm63_vm6, %v64_v30, %v58_v28 }
  0x23   :  { %vm66_vm8 = vcmp.eq.s32.totalorder %v65_v31, 0  ;;  %vm67_vm9 = vcmp.eq.s32.totalorder %v65_v31, 1 }
  0x24   :  { %v68_v33 = vsel %vm67_vm9, 8, %v210_v32  ;;  %v70_v35 = vsel %vm67_vm9, 6, %v211_v34 }
  0x25   :  { %v71_v36 = vsel %vm66_vm8, 8, %v70_v35  ;;  %v69_v39 = vsel %vm66_vm8, 0, %v68_v33 }
  0x26   :  { %v136_v38 = vadd.s32 4294967295, %v71_v36 }
  0x28   :  { %vm75_vm10 = vcmp.lt.s32.totalorder %v136_v38, %v74_v37 }
  0x29   :  { %v76_v40 = vsel %vm75_vm10, %v136_v38, %v74_v37 }
  0x2a   :  { %v77_v41 = vadd.s32 %v76_v40, %v69_v39 }
  0x2c   :  { %81 = vperm.xlu0 %153, %v77_v41  }
  0x9e   :  { %v82_v44 = vpop.permute.xlu0 %81 }
  0x9f   :  { %vm83_vm12 = vcmp.eq.s32.totalorder %v79_v43, %v82_v44 }
  0xa0   :  { %v137_v46 = vsel %vm83_vm12, 1.0, %v212_v45 }
  0xa1   :  { %139 = vmatmul.msk.f32.vlgmr.msra.gmra.mxu0 %vm89_vm11, %v137_v46 }
 0x11e   :  { %v114_v47 = vpop.f32.mrf.mxu0 }
 0x11f   :  { %118 = vst.msk [vmem:[#allocation5] sm:$0x3f] %vm117_vm13, %v114_v47 }
 0x120   :  { %129 = dma.vmem_to_hbm [thread:$0]  %s125_s17, 128, %s127_s20, [#allocation4]  }
 0x121   :  { %204 = dma.done.wait [#allocation4], 128  }
 0x122   :  { %205 = vsyncadd [#allocation4], 4294967168 }
 0x123   :  { %134 = vsyncpa [#allocation3], 1 }
 0x124   :  { %135 = vsyncpa [#allocation4], 1 }

</bundles_post_ra>
